<compile_context>
chip_gen: v7x
topology: tpu7x:2x2x1
jax: 0.10.0
libtpu: 0.0.40
codegen_flags: <defaults>
</compile_context>

<pallas_src>
import numpy as np
import jax
import jax.numpy as jnp
from jax.experimental import pallas as pl
from jax.experimental.pallas import tpu as pltpu

# ---------------- config (mirrors the PyTorch module globals / args) ----------------
CHANNEL_OUT = 3
D_MODEL = 512
ENC_IN = 6
SEQ_LEN = 8
PRED_LEN = 8
CHUNK_SIZE = min(PRED_LEN, SEQ_LEN, 4)          # args.chunk_size = 4
assert SEQ_LEN % CHUNK_SIZE == 0
NUM_CHUNKS = SEQ_LEN // CHUNK_SIZE


# ------------------------------- fused Pallas kernel --------------------------------
def _lightts_kernel(x_ref, m_ref, w1_ref, wa_ref, wb_ref, bias_ref,
                    bd3_ref, b3_ref, war_ref, out_ref, xs_ref):
    """Whole LightTS forward in one invocation (no grid).

    x_ref   : (B, T, N)            raw series, torch layout (no wrapper prep)
    m_ref   : (B, T, N)            0/1 mask
    w1_ref  : (T, 4*hid)     bf16  chunk selection + both spatial_proj[0]
    wa_ref  : (4*hid, d2)    bf16  folded affine chain up to layer_3 spatial_proj[0]
    wb_ref  : (d2, pred)     bf16  layer_3 spatial_proj[2] @ output_proj
    bias_ref: (1, 4*hid+d2+pred) f32  [b1 | b_a | b_ar]
    bd3_ref : (Rp, Rp)       f32   per-batch node mix  I + kron(I_B, wc3), 8-padded rows
    b3_ref  : (Rp, pred)     f32   all layer_3 tail biases folded per row
    war_ref : (T, pred)      f32   AR highway weight
    out_ref : (B, pred, channel_out)  de-normalized forecast, final layout
    xs_ref  : (Rp, T)        f32   scratch: normalized series, one row per (b, n)
    """
    f32 = jnp.float32
    bf16 = jnp.bfloat16
    B, T, N = x_ref.shape
    c_out = out_ref.shape[2]
    n_pad = xs_ref.shape[0] // B

    # Pad rows must stay finite: they feed the zero-coefficient bd3 columns.
    xs_ref[...] = jnp.zeros_like(xs_ref)

    # ---- instance norm per (batch, channel) series, done in the (T, N) layout ----
    stats = []
    for b in range(B):                                   # B is tiny & static
        xb = x_ref[b]                                    # (T, N)
        mb = m_ref[b]
        cnt = jnp.sum(mb, axis=0, keepdims=True)         # mask is 0/1
        inv_cnt = pl.reciprocal(cnt)                     # reused for mean & var
        mean = jnp.sum(xb, axis=0, keepdims=True) * inv_cnt
        xc = jnp.where(mb == 0.0, 0.0, xb - mean)
        var = jnp.sum(xc * xc, axis=0, keepdims=True) * inv_cnt
        std = jnp.sqrt(var + 1e-5)
        xnb = xc * pl.reciprocal(std)                    # (T, N) normalized
        # rows b*8 + n: 8-aligned block start -> plain masked sublane store
        xs_ref[b * n_pad:b * n_pad + N, :] = xnb.T
        stats.append((mean, std))

    xn = xs_ref[...]                                     # (Rp, T) f32

    def dotf(a, b):
        return jnp.dot(a, b, preferred_element_type=f32)

    w1_cols = w1_ref.shape[1]
    wa_cols = wa_ref.shape[1]
    b1 = bias_ref[:, :w1_cols]
    b_a = bias_ref[:, w1_cols:w1_cols + wa_cols]
    b_ar = bias_ref[:, w1_cols + wa_cols:]

    # ---- folded IEBlock 1/2 + chunk projections + layer_3 : 5 matmuls total ----
    h = dotf(xn.astype(bf16), w1_ref[...]) + b1          # (Rp, 4*hid)
    h = jnp.where(h > 0, h, 0.01 * h)                    # LeakyReLU(0.01)
    h3 = dotf(h.astype(bf16), wa_ref[...]) + b_a         # (Rp, d_model//2)
    h3 = jnp.where(h3 > 0, h3, 0.01 * h3)
    g = dotf(h3.astype(bf16), wb_ref[...])               # (Rp, pred_len)
    o3 = dotf(bd3_ref[...], g) + b3_ref[...]             # per-batch node mix (f32)
    hw = dotf(xn, war_ref[...]) + b_ar                   # AR highway (kept f32)
    res = o3 + hw                                        # (Rp, pred_len)

    # ---- de-normalize + write directly in (B, pred_len, channel_out) layout ----
    res_t = res.T                                        # (pred_len, Rp)
    for b in range(B):
        mean, std = stats[b]
        blk = res_t[:, b * n_pad:b * n_pad + c_out]      # (pred_len, c_out)
        out_ref[b] = blk * std[:, :c_out] + mean[:, :c_out]


# --------------------------- weight folding (wrapper side) --------------------------
def _block_diag(*blocks):
    rows = sum(b.shape[0] for b in blocks)
    cols = sum(b.shape[1] for b in blocks)
    out = jnp.zeros((rows, cols), jnp.float32)
    r = c = 0
    for b in blocks:
        out = out.at[r:r + b.shape[0], c:c + b.shape[1]].set(b)
        r += b.shape[0]
        c += b.shape[1]
    return out


def fold_params(params, batch):
    """One-time folding of the LightTS weights into the 7 operands the fused
    kernel consumes.  Every purely-affine sub-chain (between / after the two
    LeakyReLUs) is pre-multiplied here, outside the hot path."""
    w11, b11, w12, b12, wc1, bc1, wo1, bo1 = params["layer1"]
    w21, b21, w22, b22, wc2, bc2, wo2, bo2 = params["layer2"]
    w31, b31, w32, b32, wc3, bc3, wo3, bo3 = params["layer3"]
    wp1, bp1 = params["chunk1"]
    wp2, bp2 = params["chunk2"]
    war, bar = params["ar"]

    nc, cs, T = NUM_CHUNKS, CHUNK_SIZE, SEQ_LEN
    hq = w12.shape[0]                      # hid // 4 of layer 1/2
    od = wo1.shape[0]                      # output_dim of layer 1/2
    eye = lambda n: jnp.eye(n, dtype=jnp.float32)

    # chunk-selection matrices (time index -> chunk entries), static constants
    s_cont = np.zeros((nc, T, cs), np.float32)     # x1: t = j*cs + c  ("continuous")
    s_int = np.zeros((nc, T, cs), np.float32)      # x2: t = c*nc + j  ("interval")
    for j in range(nc):
        for c in range(cs):
            s_cont[j, j * cs + c, c] = 1.0
            s_int[j, c * nc + j, c] = 1.0
    s_cont = jnp.asarray(s_cont)
    s_int = jnp.asarray(s_int)

    # lane-block order: [branch1 j=0 | branch1 j=1 | branch2 j=0 | branch2 j=1]
    w1_cat = jnp.concatenate([s_cont[j] @ w11.T for j in range(nc)]
                             + [s_int[j] @ w21.T for j in range(nc)], axis=1)
    b1_cat = jnp.concatenate([b11] * nc + [b21] * nc).reshape(1, -1)

    # ---- affine chain between the two LeakyReLUs, pre-multiplied into ONE matrix ----
    w2_bd = _block_diag(*([w12.T] * nc + [w22.T] * nc))
    b2_cat = jnp.concatenate([b12] * nc + [b22] * nc).reshape(1, -1)
    m_chan = eye(2 * nc * hq) + _block_diag(jnp.kron(wc1.T, eye(hq)),
                                            jnp.kron(wc2.T, eye(hq)))
    bc_cat = jnp.concatenate([jnp.repeat(bc1, hq), jnp.repeat(bc2, hq)]).reshape(1, -1)
    wo_bd = _block_diag(*([wo1.T] * nc + [wo2.T] * nc))
    bo_cat = jnp.concatenate([bo1] * nc + [bo2] * nc).reshape(1, -1)
    w_chunk = _block_diag(jnp.kron(wp1.T, eye(od)), jnp.kron(wp2.T, eye(od)))
    b_chunk = jnp.concatenate([jnp.repeat(bp1, od), jnp.repeat(bp2, od)]).reshape(1, -1)

    m1 = w2_bd @ m_chan @ wo_bd @ w_chunk                           # (4*hid, d2)
    c1 = ((b2_cat @ m_chan + bc_cat) @ wo_bd + bo_cat) @ w_chunk + b_chunk
    w_a = m1 @ w31.T                                                # (4*hid, d2)
    b_a = c1 @ w31.T + b31.reshape(1, -1)                           # (1, d2)

    # ---- layer_3 tail: commute the node (row) mix past output_proj ----
    w_b = w32.T @ wo3.T                                             # (d2, pred)
    n_node = wc3.shape[0]
    n_pad = -(-n_node // 8) * 8                   # 8-aligned rows per batch
    rp = batch * n_pad
    block = eye(n_node) + wc3                                       # I + channel_proj
    b32w3o = b32.reshape(1, -1) @ wo3.T                             # (1, pred)
    colsum = jnp.sum(wo3.T, axis=0, keepdims=True)                  # (1, pred)
    b3_blk = (jnp.sum(block, axis=1, keepdims=True) @ b32w3o
              + bc3.reshape(-1, 1) @ colsum + bo3.reshape(1, -1))   # (N, pred)
    bd3 = jnp.zeros((rp, rp), jnp.float32)
    b3 = jnp.zeros((rp, PRED_LEN), jnp.float32)
    for b in range(batch):
        r0 = b * n_pad
        bd3 = bd3.at[r0:r0 + n_node, r0:r0 + n_node].set(block)
        b3 = b3.at[r0:r0 + n_node, :].set(b3_blk)

    # all remaining bias rows packed into one operand: [b1 | b_a | b_ar]
    bias_cat = jnp.concatenate([b1_cat, b_a, bar.reshape(1, -1)], axis=1)

    bf16 = jnp.bfloat16
    return (w1_cat.astype(bf16), w_a.astype(bf16), w_b.astype(bf16),
            bias_cat, bd3, b3, war.T)


# ---------------------------- full forward (Pallas path) ----------------------------
@jax.jit
def lightts_forward(x_enc, mask, folded):
    B, T, N = x_enc.shape
    n_pad = -(-N // 8) * 8
    rp = B * n_pad
    args = (x_enc, mask) + tuple(folded)
    return pl.pallas_call(
        _lightts_kernel,
        out_shape=jax.ShapeDtypeStruct((B, PRED_LEN, CHANNEL_OUT), jnp.float32),
        in_specs=[pl.BlockSpec(memory_space=pltpu.MemorySpace.VMEM)] * len(args),
        out_specs=pl.BlockSpec(memory_space=pltpu.MemorySpace.VMEM),
        scratch_shapes=[pltpu.VMEM((rp, T), jnp.float32)],
    )(*args)


# ---------------------------- pure-JAX reference (torch semantics) ------------------
def _ie_block_ref(x, p):
    # x: (B', input_dim, num_node)  -- torch IEBlock input layout
    w1, b1, w2, b2, wc, bc, wo, bo = p
    xp = jnp.transpose(x, (0, 2, 1))                  # (B', num_node, input_dim)
    h = xp @ w1.T + b1
    h = jnp.where(h > 0, h, 0.01 * h)
    s = h @ w2.T + b2                                 # (B', num_node, hid//4)
    sp = jnp.transpose(s, (0, 2, 1))                  # (B', hid//4, num_node)
    sp = sp + (sp @ wc.T + bc)
    o = jnp.transpose(sp, (0, 2, 1)) @ wo.T + bo      # (B', num_node, out_dim)
    return jnp.transpose(o, (0, 2, 1))                # (B', out_dim, num_node)


def lightts_ref(x_enc, mask, params):
    B, T, N = x_enc.shape
    cnt = jnp.sum((mask == 1).astype(jnp.float32), axis=1)
    means = jnp.sum(x_enc, axis=1) / cnt
    x = x_enc - means[:, None, :]
    x = jnp.where(mask == 0, 0.0, x)
    stdev = jnp.sqrt(jnp.sum(x * x, axis=1) / cnt + 1e-5)
    x = x / stdev[:, None, :]

    war, bar = params["ar"]
    highway = jnp.transpose(jnp.transpose(x, (0, 2, 1)) @ war.T + bar, (0, 2, 1))

    x1 = x.reshape(B, NUM_CHUNKS, CHUNK_SIZE, N).transpose(0, 3, 2, 1)
    x1 = x1.reshape(B * N, CHUNK_SIZE, NUM_CHUNKS)
    wp1, bp1 = params["chunk1"]
    y1 = (_ie_block_ref(x1, params["layer1"]) @ wp1.T + bp1)[..., 0]

    x2 = x.reshape(B, CHUNK_SIZE, NUM_CHUNKS, N).transpose(0, 3, 1, 2)
    x2 = x2.reshape(B * N, CHUNK_SIZE, NUM_CHUNKS)
    wp2, bp2 = params["chunk2"]
    y2 = (_ie_block_ref(x2, params["layer2"]) @ wp2.T + bp2)[..., 0]

    x3 = jnp.concatenate([y1, y2], axis=-1).reshape(B, N, -1).transpose(0, 2, 1)
    out = _ie_block_ref(x3, params["layer3"]) + highway           # (B, pred_len, N)
    out = out * stdev[:, None, :] + means[:, None, :]
    return out[:, -PRED_LEN:, :CHANNEL_OUT]


# ---------------------------- deterministic parameter init --------------------------
def _linear(key, out_f, in_f, scale=0.05):
    kw, kb = jax.random.split(key)
    return (jax.random.normal(kw, (out_f, in_f), jnp.float32) * scale,
            jax.random.normal(kb, (out_f,), jnp.float32) * scale)


def _ie_params(key, input_dim, hid_dim, output_dim, num_node):
    k1, k2, k3, k4 = jax.random.split(key, 4)
    w1, b1 = _linear(k1, hid_dim, input_dim)
    w2, b2 = _linear(k2, hid_dim // 4, hid_dim)
    wc = jnp.eye(num_node, dtype=jnp.float32)          # torch.nn.init.eye_
    bc = jax.random.normal(k3, (num_node,), jnp.float32) * 0.05
    wo, bo = _linear(k4, output_dim, hid_dim // 4)
    return (w1, b1, w2, b2, wc, bc, wo, bo)


def init_params(key):
    ks = jax.random.split(key, 6)
    return {
        "layer1": _ie_params(ks[0], CHUNK_SIZE, D_MODEL // 4, D_MODEL // 4, NUM_CHUNKS),
        "chunk1": _linear(ks[1], 1, NUM_CHUNKS),
        "layer2": _ie_params(ks[2], CHUNK_SIZE, D_MODEL // 4, D_MODEL // 4, NUM_CHUNKS),
        "chunk2": _linear(ks[3], 1, NUM_CHUNKS),
        "layer3": _ie_params(ks[4], D_MODEL // 2, D_MODEL // 2, PRED_LEN, ENC_IN),
        "ar": _linear(ks[5], PRED_LEN, SEQ_LEN),
    }


# -------------------------------------- main ----------------------------------------
if __name__ == "__main__":
    key = jax.random.PRNGKey(0)
    kx, kp = jax.random.split(key)
    B = 2
    x_enc = jax.random.normal(kx, (B, SEQ_LEN, ENC_IN), jnp.float32)
    mask = jnp.ones((B, SEQ_LEN, ENC_IN), jnp.float32).at[:, :2, :].set(0.0)
    params = init_params(kp)
    folded = fold_params(params, B)           # one-time weight folding

    out = lightts_forward(x_enc, mask, folded)
    out = jax.block_until_ready(out)
    assert out.shape == (B, PRED_LEN, CHANNEL_OUT), out.shape

    ref = jax.block_until_ready(lightts_ref(x_enc, mask, params))
    err = float(jnp.max(jnp.abs(out - ref)))
    assert jnp.allclose(out, ref, rtol=2e-3, atol=2e-3), err

    print("KERNEL_OK")
</pallas_src>

<mosaic_0001>
module attributes {stable_mosaic.version = 11 : i64} {
  func.func @_lightts_kernel(%arg0: memref<2x8x6xf32, #tpu.memory_space<vmem>>, %arg1: memref<2x8x6xf32, #tpu.memory_space<vmem>>, %arg2: memref<8x512xbf16, #tpu.memory_space<vmem>>, %arg3: memref<512x256xbf16, #tpu.memory_space<vmem>>, %arg4: memref<256x8xbf16, #tpu.memory_space<vmem>>, %arg5: memref<1x776xf32, #tpu.memory_space<vmem>>, %arg6: memref<16x16xf32, #tpu.memory_space<vmem>>, %arg7: memref<16x8xf32, #tpu.memory_space<vmem>>, %arg8: memref<8x8xf32, #tpu.memory_space<vmem>>, %arg9: memref<2x8x3xf32, #tpu.memory_space<vmem>>, %arg10: memref<16x8xf32, #tpu.memory_space<vmem>>) attributes {dimension_semantics = [], scalar_prefetch = 0 : i64, scratch_operands = 1 : i64, tpu.core_type = #tpu.core_type<tc>} {
    %cst = arith.constant 0.000000e+00 : f32
    %0 = vector.broadcast %cst : f32 to vector<16x8xf32>
    %c0 = arith.constant 0 : index
    %c0_0 = arith.constant 0 : index
    %1 = vector.load %arg10[%c0, %c0_0] : memref<16x8xf32, #tpu.memory_space<vmem>>, vector<16x8xf32>
    tpu.vector_store %arg10[%c0, %c0_0], %0 {strides = array<i32>} : memref<16x8xf32, #tpu.memory_space<vmem>>, vector<16x8xf32>,
    %c0_1 = arith.constant 0 : index
    %c0_2 = arith.constant 0 : index
    %c0_3 = arith.constant 0 : index
    %2 = vector.load %arg0[%c0_1, %c0_2, %c0_3] : memref<2x8x6xf32, #tpu.memory_space<vmem>>, vector<1x8x6xf32>
    %3 = vector.shape_cast %2 : vector<1x8x6xf32> to vector<8x6xf32>
    %c0_4 = arith.constant 0 : index
    %c0_5 = arith.constant 0 : index
    %c0_6 = arith.constant 0 : index
    %4 = vector.load %arg1[%c0_4, %c0_5, %c0_6] : memref<2x8x6xf32, #tpu.memory_space<vmem>>, vector<1x8x6xf32>
    %5 = vector.shape_cast %4 : vector<1x8x6xf32> to vector<8x6xf32>
    %cst_7 = arith.constant dense<0.000000e+00> : vector<6xf32>
    %6 = vector.multi_reduction <add>, %5, %cst_7 [0] : vector<8x6xf32> to vector<6xf32>
    %7 = vector.shape_cast %6 : vector<6xf32> to vector<1x6xf32>
    %8 = tpu.reciprocal %7 : vector<1x6xf32> -> vector<1x6xf32>
    %cst_8 = arith.constant dense<0.000000e+00> : vector<6xf32>
    %9 = vector.multi_reduction <add>, %3, %cst_8 [0] : vector<8x6xf32> to vector<6xf32>
    %10 = vector.shape_cast %9 : vector<6xf32> to vector<1x6xf32>
    %11 = arith.mulf %10, %8 : vector<1x6xf32>
    %cst_9 = arith.constant 0.000000e+00 : f32
    %12 = vector.broadcast %cst_9 : f32 to vector<8x6xf32>
    %13 = arith.cmpf oeq, %5, %12 : vector<8x6xf32>
    %14 = vector.broadcast %11 : vector<1x6xf32> to vector<8x6xf32>
    %15 = arith.subf %3, %14 : vector<8x6xf32>
    %cst_10 = arith.constant 0.000000e+00 : f32
    %16 = vector.broadcast %cst_10 : f32 to vector<8x6xf32>
    %17 = arith.select %13, %16, %15 : vector<8x6xi1>, vector<8x6xf32>
    %18 = arith.mulf %17, %17 : vector<8x6xf32>
    %cst_11 = arith.constant dense<0.000000e+00> : vector<6xf32>
    %19 = vector.multi_reduction <add>, %18, %cst_11 [0] : vector<8x6xf32> to vector<6xf32>
    %20 = vector.shape_cast %19 : vector<6xf32> to vector<1x6xf32>
    %21 = arith.mulf %20, %8 : vector<1x6xf32>
    %cst_12 = arith.constant 9.99999974E-6 : f32
    %22 = vector.broadcast %cst_12 : f32 to vector<1x6xf32>
    %23 = arith.addf %21, %22 : vector<1x6xf32>
    %24 = math.sqrt %23 : vector<1x6xf32>
    %25 = tpu.reciprocal %24 : vector<1x6xf32> -> vector<1x6xf32>
    %26 = vector.broadcast %25 : vector<1x6xf32> to vector<8x6xf32>
    %27 = arith.mulf %17, %26 : vector<8x6xf32>
    %28 = tpu.transpose %27, [1, 0] : vector<8x6xf32> -> vector<6x8xf32>
    %c0_13 = arith.constant 0 : index
    %c0_14 = arith.constant 0 : index
    %29 = vector.load %arg10[%c0_13, %c0_14] : memref<16x8xf32, #tpu.memory_space<vmem>>, vector<6x8xf32>
    tpu.vector_store %arg10[%c0_13, %c0_14], %28 {strides = array<i32>} : memref<16x8xf32, #tpu.memory_space<vmem>>, vector<6x8xf32>,
    %c1 = arith.constant 1 : index
    %c0_15 = arith.constant 0 : index
    %c0_16 = arith.constant 0 : index
    %30 = vector.load %arg0[%c1, %c0_15, %c0_16] : memref<2x8x6xf32, #tpu.memory_space<vmem>>, vector<1x8x6xf32>
    %31 = vector.shape_cast %30 : vector<1x8x6xf32> to vector<8x6xf32>
    %c1_17 = arith.constant 1 : index
    %c0_18 = arith.constant 0 : index
    %c0_19 = arith.constant 0 : index
    %32 = vector.load %arg1[%c1_17, %c0_18, %c0_19] : memref<2x8x6xf32, #tpu.memory_space<vmem>>, vector<1x8x6xf32>
    %33 = vector.shape_cast %32 : vector<1x8x6xf32> to vector<8x6xf32>
    %cst_20 = arith.constant dense<0.000000e+00> : vector<6xf32>
    %34 = vector.multi_reduction <add>, %33, %cst_20 [0] : vector<8x6xf32> to vector<6xf32>
    %35 = vector.shape_cast %34 : vector<6xf32> to vector<1x6xf32>
    %36 = tpu.reciprocal %35 : vector<1x6xf32> -> vector<1x6xf32>
    %cst_21 = arith.constant dense<0.000000e+00> : vector<6xf32>
    %37 = vector.multi_reduction <add>, %31, %cst_21 [0] : vector<8x6xf32> to vector<6xf32>
    %38 = vector.shape_cast %37 : vector<6xf32> to vector<1x6xf32>
    %39 = arith.mulf %38, %36 : vector<1x6xf32>
    %cst_22 = arith.constant 0.000000e+00 : f32
    %40 = vector.broadcast %cst_22 : f32 to vector<8x6xf32>
    %41 = arith.cmpf oeq, %33, %40 : vector<8x6xf32>
    %42 = vector.broadcast %39 : vector<1x6xf32> to vector<8x6xf32>
    %43 = arith.subf %31, %42 : vector<8x6xf32>
    %cst_23 = arith.constant 0.000000e+00 : f32
    %44 = vector.broadcast %cst_23 : f32 to vector<8x6xf32>
    %45 = arith.select %41, %44, %43 : vector<8x6xi1>, vector<8x6xf32>
    %46 = arith.mulf %45, %45 : vector<8x6xf32>
    %cst_24 = arith.constant dense<0.000000e+00> : vector<6xf32>
    %47 = vector.multi_reduction <add>, %46, %cst_24 [0] : vector<8x6xf32> to vector<6xf32>
    %48 = vector.shape_cast %47 : vector<6xf32> to vector<1x6xf32>
    %49 = arith.mulf %48, %36 : vector<1x6xf32>
    %cst_25 = arith.constant 9.99999974E-6 : f32
    %50 = vector.broadcast %cst_25 : f32 to vector<1x6xf32>
    %51 = arith.addf %49, %50 : vector<1x6xf32>
    %52 = math.sqrt %51 : vector<1x6xf32>
    %53 = tpu.reciprocal %52 : vector<1x6xf32> -> vector<1x6xf32>
    %54 = vector.broadcast %53 : vector<1x6xf32> to vector<8x6xf32>
    %55 = arith.mulf %45, %54 : vector<8x6xf32>
    %56 = tpu.transpose %55, [1, 0] : vector<8x6xf32> -> vector<6x8xf32>
    %c8 = arith.constant 8 : index
    %c0_26 = arith.constant 0 : index
    %57 = vector.load %arg10[%c8, %c0_26] : memref<16x8xf32, #tpu.memory_space<vmem>>, vector<6x8xf32>
    tpu.vector_store %arg10[%c8, %c0_26], %56 {strides = array<i32>} : memref<16x8xf32, #tpu.memory_space<vmem>>, vector<6x8xf32>,
    %c0_27 = arith.constant 0 : index
    %c0_28 = arith.constant 0 : index
    %58 = vector.load %arg10[%c0_27, %c0_28] : memref<16x8xf32, #tpu.memory_space<vmem>>, vector<16x8xf32>
    %c0_29 = arith.constant 0 : index
    %c0_30 = arith.constant 0 : index
    %59 = vector.load %arg5[%c0_29, %c0_30] : memref<1x776xf32, #tpu.memory_space<vmem>>, vector<1x512xf32>
    %c0_31 = arith.constant 0 : index
    %c512 = arith.constant 512 : index
    %60 = vector.load %arg5[%c0_31, %c512] : memref<1x776xf32, #tpu.memory_space<vmem>>, vector<1x256xf32>
    %c0_32 = arith.constant 0 : index
    %c768 = arith.constant 768 : index
    %61 = vector.load %arg5[%c0_32, %c768] : memref<1x776xf32, #tpu.memory_space<vmem>>, vector<1x8xf32>
    %62 = arith.truncf %58 : vector<16x8xf32> to vector<16x8xbf16>
    %c0_33 = arith.constant 0 : index
    %c0_34 = arith.constant 0 : index
    %63 = vector.load %arg2[%c0_33, %c0_34] : memref<8x512xbf16, #tpu.memory_space<vmem>>, vector<8x512xbf16>
    %cst_35 = arith.constant dense<0.000000e+00> : vector<16x512xf32>
    %64 = tpu.matmul %62, %63, %cst_35 {dimension_numbers = #tpu.dot_dimension_numbers<[1], [0], [0], [1], [0, 0, 1, 1], [], []>} : vector<16x8xbf16>, vector<8x512xbf16>, vector<16x512xf32> -> vector<16x512xf32>
    %65 = vector.broadcast %59 : vector<1x512xf32> to vector<16x512xf32>
    %66 = arith.addf %64, %65 : vector<16x512xf32>
    %cst_36 = arith.constant 0.000000e+00 : f32
    %67 = vector.broadcast %cst_36 : f32 to vector<16x512xf32>
    %68 = arith.cmpf ogt, %66, %67 : vector<16x512xf32>
    %cst_37 = arith.constant 0.00999999977 : f32
    %69 = vector.broadcast %cst_37 : f32 to vector<16x512xf32>
    %70 = arith.mulf %69, %66 : vector<16x512xf32>
    %71 = arith.select %68, %66, %70 : vector<16x512xi1>, vector<16x512xf32>
    %72 = arith.truncf %71 : vector<16x512xf32> to vector<16x512xbf16>
    %c0_38 = arith.constant 0 : index
    %c0_39 = arith.constant 0 : index
    %73 = vector.load %arg3[%c0_38, %c0_39] : memref<512x256xbf16, #tpu.memory_space<vmem>>, vector<512x256xbf16>
    %cst_40 = arith.constant dense<0.000000e+00> : vector<16x256xf32>
    %74 = tpu.matmul %72, %73, %cst_40 {dimension_numbers = #tpu.dot_dimension_numbers<[1], [0], [0], [1], [0, 0, 1, 1], [], []>} : vector<16x512xbf16>, vector<512x256xbf16>, vector<16x256xf32> -> vector<16x256xf32>
    %75 = vector.broadcast %60 : vector<1x256xf32> to vector<16x256xf32>
    %76 = arith.addf %74, %75 : vector<16x256xf32>
    %cst_41 = arith.constant 0.000000e+00 : f32
    %77 = vector.broadcast %cst_41 : f32 to vector<16x256xf32>
    %78 = arith.cmpf ogt, %76, %77 : vector<16x256xf32>
    %cst_42 = arith.constant 0.00999999977 : f32
    %79 = vector.broadcast %cst_42 : f32 to vector<16x256xf32>
    %80 = arith.mulf %79, %76 : vector<16x256xf32>
    %81 = arith.select %78, %76, %80 : vector<16x256xi1>, vector<16x256xf32>
    %82 = arith.truncf %81 : vector<16x256xf32> to vector<16x256xbf16>
    %c0_43 = arith.constant 0 : index
    %c0_44 = arith.constant 0 : index
    %83 = vector.load %arg4[%c0_43, %c0_44] : memref<256x8xbf16, #tpu.memory_space<vmem>>, vector<256x8xbf16>
    %cst_45 = arith.constant dense<0.000000e+00> : vector<16x8xf32>
    %84 = tpu.matmul %82, %83, %cst_45 {dimension_numbers = #tpu.dot_dimension_numbers<[1], [0], [0], [1], [0, 0, 1, 1], [], []>} : vector<16x256xbf16>, vector<256x8xbf16>, vector<16x8xf32> -> vector<16x8xf32>
    %c0_46 = arith.constant 0 : index
    %c0_47 = arith.constant 0 : index
    %85 = vector.load %arg6[%c0_46, %c0_47] : memref<16x16xf32, #tpu.memory_space<vmem>>, vector<16x16xf32>
    %cst_48 = arith.constant dense<0.000000e+00> : vector<16x8xf32>
    %86 = tpu.matmul %85, %84, %cst_48 {dimension_numbers = #tpu.dot_dimension_numbers<[1], [0], [0], [1], [0, 0, 1, 1], [], []>} : vector<16x16xf32>, vector<16x8xf32>, vector<16x8xf32> -> vector<16x8xf32>
    %c0_49 = arith.constant 0 : index
    %c0_50 = arith.constant 0 : index
    %87 = vector.load %arg7[%c0_49, %c0_50] : memref<16x8xf32, #tpu.memory_space<vmem>>, vector<16x8xf32>
    %88 = arith.addf %86, %87 : vector<16x8xf32>
    %c0_51 = arith.constant 0 : index
    %c0_52 = arith.constant 0 : index
    %89 = vector.load %arg8[%c0_51, %c0_52] : memref<8x8xf32, #tpu.memory_space<vmem>>, vector<8x8xf32>
    %cst_53 = arith.constant dense<0.000000e+00> : vector<16x8xf32>
    %90 = tpu.matmul %58, %89, %cst_53 {dimension_numbers = #tpu.dot_dimension_numbers<[1], [0], [0], [1], [0, 0, 1, 1], [], []>} : vector<16x8xf32>, vector<8x8xf32>, vector<16x8xf32> -> vector<16x8xf32>
    %91 = vector.broadcast %61 : vector<1x8xf32> to vector<16x8xf32>
    %92 = arith.addf %90, %91 : vector<16x8xf32>
    %93 = arith.addf %88, %92 : vector<16x8xf32>
    %94 = tpu.transpose %93, [1, 0] : vector<16x8xf32> -> vector<8x16xf32>
    %95 = vector.extract_strided_slice %94 {offsets = [0, 0], sizes = [8, 3], strides = [1, 1]} : vector<8x16xf32> to vector<8x3xf32>
    %96 = vector.extract_strided_slice %24 {offsets = [0, 0], sizes = [1, 3], strides = [1, 1]} : vector<1x6xf32> to vector<1x3xf32>
    %97 = vector.broadcast %96 : vector<1x3xf32> to vector<8x3xf32>
    %98 = arith.mulf %95, %97 : vector<8x3xf32>
    %99 = vector.extract_strided_slice %11 {offsets = [0, 0], sizes = [1, 3], strides = [1, 1]} : vector<1x6xf32> to vector<1x3xf32>
    %100 = vector.broadcast %99 : vector<1x3xf32> to vector<8x3xf32>
    %101 = arith.addf %98, %100 : vector<8x3xf32>
    %c0_54 = arith.constant 0 : index
    %c0_55 = arith.constant 0 : index
    %c0_56 = arith.constant 0 : index
    %102 = vector.load %arg9[%c0_54, %c0_55, %c0_56] : memref<2x8x3xf32, #tpu.memory_space<vmem>>, vector<1x8x3xf32>
    %103 = vector.shape_cast %102 : vector<1x8x3xf32> to vector<8x3xf32>
    %104 = vector.shape_cast %101 : vector<8x3xf32> to vector<1x8x3xf32>
    tpu.vector_store %arg9[%c0_54, %c0_55, %c0_56], %104 {strides = array<i32>} : memref<2x8x3xf32, #tpu.memory_space<vmem>>, vector<1x8x3xf32>,
    %105 = vector.extract_strided_slice %94 {offsets = [0, 8], sizes = [8, 3], strides = [1, 1]} : vector<8x16xf32> to vector<8x3xf32>
    %106 = vector.extract_strided_slice %52 {offsets = [0, 0], sizes = [1, 3], strides = [1, 1]} : vector<1x6xf32> to vector<1x3xf32>
    %107 = vector.broadcast %106 : vector<1x3xf32> to vector<8x3xf32>
    %108 = arith.mulf %105, %107 : vector<8x3xf32>
    %109 = vector.extract_strided_slice %39 {offsets = [0, 0], sizes = [1, 3], strides = [1, 1]} : vector<1x6xf32> to vector<1x3xf32>
    %110 = vector.broadcast %109 : vector<1x3xf32> to vector<8x3xf32>
    %111 = arith.addf %108, %110 : vector<8x3xf32>
    %c1_57 = arith.constant 1 : index
    %c0_58 = arith.constant 0 : index
    %c0_59 = arith.constant 0 : index
    %112 = vector.load %arg9[%c1_57, %c0_58, %c0_59] : memref<2x8x3xf32, #tpu.memory_space<vmem>>, vector<1x8x3xf32>
    %113 = vector.shape_cast %112 : vector<1x8x3xf32> to vector<8x3xf32>
    %114 = vector.shape_cast %111 : vector<8x3xf32> to vector<1x8x3xf32>
    tpu.vector_store %arg9[%c1_57, %c0_58, %c0_59], %114 {strides = array<i32>} : memref<2x8x3xf32, #tpu.memory_space<vmem>>, vector<1x8x3xf32>,
    return
  }
}

</mosaic_0001>

<bundles_post_ra>
// kernel: lightts_forward.1
= control target key start
LH: loop header
LB: loop body
LE: loop exit
PB: predicated region body
PF: predicated region fallthrough
CT: control target
= control target key end

     0   :  { %14 = vsyncpa [#allocation4], 0  ;;  %s1579_s30 = smov [#allocation3]   ;;  %s1790_s0 = inlined_call_operand.vmem [shape: f32[2,8,6], index: 0, kind: input, shape index: {}]   ;;  %s1791_s1 = inlined_call_operand.vmem [shape: f32[2,8,6], index: 1, kind: input, shape index: {}]   ;;  %s1792_s2 = inlined_call_operand.vmem [shape: bf16[8,512], index: 2, kind: input, shape index: {}]   ;;  %s1793_s3 = inlined_call_operand.hbm [shape: bf16[512,256], index: 3, kind: input, shape index: {}]   ;;  %s1794_s4 = inlined_call_operand.vmem [shape: bf16[256,8], index: 4, kind: input, shape index: {}]   ;;  %s1795_s5 = inlined_call_operand.vmem [shape: f32[1,776], index: 5, kind: input, shape index: {}]   ;;  %s1796_s6 = inlined_call_operand.vmem [shape: f32[16,16], index: 6, kind: input, shape index: {}]   ;;  %s1797_s7 = inlined_call_operand.vmem [shape: f32[16,8], index: 7, kind: input, shape index: {}]   ;;  %s1798_s8 = inlined_call_operand.vmem [shape: f32[8,8], index: 8, kind: input, shape index: {}]   ;;  %s1799_s9 = inlined_call_operand.vmem [shape: f32[2,8,3], index: 9, kind: output, shape index: {}]  }
   0x1   :  { %s26_s10 = sshll.u32 %s1579_s30, 4  ;;  %s1555_s13 = scalar_lea.hbm %s1793_s3, 8192  ;;  %s27_s10 = int_to_ptr.vmem [resolvable:$true] %s26_s10 }
   0x2   :  { %p1556_p0 = scmp.ne.s32.totalorder %s1793_s3, %s1555_s13  ;;  %p1559_p1 = scmp.lt.u32.totalorder %s1555_s13, %s1793_s3 }
   0x4   :  { %p1561_p2 = pnand %p1559_p1, %p1556_p0 }
   0x6   :  { %1564 = shalt.err (!%p1561_p2)
}
   0x7   :  { %s1565_s18 = scalar_lea.vmem %s27_s10, 8192  ;;  %p1570_p4 = scmp.lt.s32.totalorder %s27_s10, %s27_s10 }
   0x8   :  { %p1566_p3 = scmp.ne.s32.totalorder %s27_s10, %s1565_s18  ;;  %p1571_p5 = scmp.lt.s32.totalorder %s1565_s18, %s1565_s18 }
   0xa   :  { %p1572_p6 = por %p1571_p5, %p1570_p4 }
   0xc   :  { %p1573_p7 = pnand %p1572_p6, %p1566_p3 }
   0xe   :  { %1576 = shalt.err (!%p1573_p7)
}
   0xf   :  { %s1580_s19 = smov 128   ;;  %s1581_s20 = smov 8  }
  0x10   :  { %32 = dma.hbm_to_vmem [thread:$0]  %s1793_s3, 8192, %s27_s10, [#allocation4], %s1580_s19, %s1580_s19, %s1581_s20  }
  0x11   :  { %1577 = dma.done.wait [#allocation4], 8192  }
  0x12   :  { %1578 = vsyncadd [#allocation4], 4294959104  ;;  %vm47_vm0 = vcmask 64512   ;;  %v1582_v0 = vmov 0.0   ;;  %vm52_vm1 = vcmask 48128   ;;  %v50_v1 = vld [vmem:[%s1790_s0] sm:$0xff] }
  0x13   :  { %48 = vst.msk [vmem:[#allocation2] sm:$0xff] %vm47_vm0, %v1582_v0  ;;  %49 = vst.msk [vmem:[#allocation2 + $0x8] sm:$0xff] %vm47_vm0, %v1582_v0  ;;  %v51_v2 = vld [vmem:[%s1791_s1] sm:$0xff]  ;;  %v1266_v3 = vld [vmem:[%s1790_s0 + $0x8] sm:$0xff]  ;;  %v61_v5 = vsel %vm52_vm1, %v50_v1, 0.0  ;;  %vm242_vm8 = vcmask 1043456  }
  0x14   :  { %v53_v4 = vsel %vm52_vm1, %v51_v2, 0.0  ;;  %v1267_v6 = vld [vmem:[%s1791_s1 + $0x8] sm:$0xff]  ;;  %v137_v7 = vsel %vm52_vm1, %v1266_v3, 0.0  ;;  %v62_v9 = vrot.slane %v61_v5, 4  ;;  %vm69_vm2 = vcmp.eq.f32.partialorder %v51_v2, 0.0 }
  0x15   :  { %v54_v8 = vrot.slane %v53_v4, 4  ;;  %v129_v10 = vsel %vm52_vm1, %v1267_v6, 0.0  ;;  %v138_v11 = vrot.slane %v137_v7, 4  ;;  %vm145_vm3 = vcmp.eq.f32.partialorder %v1267_v6, 0.0 }
  0x16   :  { %v130_v12 = vrot.slane %v129_v10, 4  ;;  %v63_v14 = vadd.f32 %v62_v9, %v61_v5  ;;  %vm123_vm9 = vcmask 62464  }
  0x17   :  { %v55_v13 = vadd.f32 %v54_v8, %v53_v4  ;;  %v139_v17 = vadd.f32 %v138_v11, %v137_v7  ;;  %v206_v11 = vld [vmem:[%s1792_s2] sm:$0xff] }
  0x18   :  { %v131_v15 = vadd.f32 %v130_v12, %v129_v10  ;;  %v64_v20 = vrot.slane %v63_v14, 2  ;;  %v1269_v12 = vcombine.high %v206_v11, %v206_v11 }
  0x19   :  { %v56_v16 = vrot.slane %v55_v13, 2  ;;  %v140_v23 = vrot.slane %v139_v17, 2 }
  0x1a   :  { %v132_v18 = vrot.slane %v131_v15, 2  ;;  %v65_v26 = vadd.f32 %v64_v20, %v63_v14  ;;  %v1583_v14 = vmov 0   ;;  %1272 = vmatprep.subr.msk.bf16.mxu1 %vm242_vm8, %v1269_v12  ;;  %v1440_v20 = vld [vmem:[#allocation3 + $0x104] ss:$8 sps:$4 sm:$0xff]   ;;  %v1506_v12 = vld [vmem:[#allocation3 + $0x1b4] ss:$8 sps:$4 sm:$0xff]  }
  0x1b   :  { %v57_v19 = vadd.f32 %v56_v16, %v55_v13  ;;  %v141_v28 = vadd.f32 %v140_v23, %v139_v17  ;;  %v1268_v13 = vcombine.low %v206_v11, %v206_v11  ;;  %287 = vmatprep.mubr.bf16.mxu1 %v1583_v14  ;;  %v207_v16 = vld [vmem:[%s1792_s2 + $0x8] sm:$0xff]  ;;  %807 = vmatprep.subr.bf16.mxu0 %v1440_v20  ;;  %v1448_v23 = vld [vmem:[#allocation3 + $0x110] ss:$8 sps:$4 sm:$0xff]   ;;  %v1505_v11 = vld [vmem:[#allocation3 + $0xd4] ss:$8 sps:$4 sm:$0xff]  }
  0x1c   :  { %v133_v21 = vadd.f32 %v132_v18, %v131_v15  ;;  %v66_v29 = vrot.slane %v65_v26, 1  ;;  %v1271_v17 = vcombine.high %v207_v16, %v207_v16  ;;  %v1270_v18 = vcombine.low %v207_v16, %v207_v16  ;;  %v1512_v16 = vld [vmem:[#allocation3 + $0x1c4] ss:$8 sps:$4 sm:$0xff]   ;;  %v1518_v20 = vld [vmem:[#allocation3 + $0x1d4] ss:$8 sps:$4 sm:$0xff]  }
  0x1d   :  { %v58_v22 = vrot.slane %v57_v19, 1  ;;  %v142_v30 = vrot.slane %v141_v28, 1  ;;  %v244_v15 = vsel %vm242_vm8, %v1268_v13, 0  ;;  %v1503_v13 = vld [vmem:[#allocation3 + $0xd0] ss:$8 sps:$4 sm:$0xff]  }
  0x1e   :  { %v134_v24 = vrot.slane %v133_v21, 1  ;;  %v67_v31 = vadd.f32 %v66_v29, %v65_v26  ;;  %256 = vmatpush1.bf16.msra.mxu1 %v244_v15  ;;  %v1458_v26 = vld [vmem:[#allocation3 + $0x134] ss:$8 sps:$4 sm:$0xff]   ;;  %v1466_v29 = vld [vmem:[#allocation3 + $0x140] ss:$8 sps:$4 sm:$0xff]  }
  0x1f   :  { %v59_v25 = vadd.f32 %v58_v22, %v57_v19  ;;  %v143_v32 = vadd.f32 %v142_v30, %v141_v28  ;;  %1274 = vmatprep.subr.msk.bf16.mxu1 %vm242_vm8, %v1271_v17  ;;  %v250_v19 = vsel %vm242_vm8, %v1270_v18, 0  ;;  %v1446_v22 = vld [vmem:[#allocation3 + $0x114] ss:$8 sps:$4 sm:$0xff]   ;;  %v1464_v28 = vld [vmem:[#allocation3 + $0x144] ss:$8 sps:$4 sm:$0xff]  }
  0x20   :  { %v135_v27 = vadd.f32 %v134_v24, %v133_v21  ;;  %v1442_v21 = vld [vmem:[#allocation3 + $0x100] ss:$8 sps:$4 sm:$0xff]   ;;  %v1452_v24 = vld [vmem:[#allocation3 + $0x124] ss:$8 sps:$4 sm:$0xff]   ;;  %v1470_v30 = vld [vmem:[#allocation3 + $0x154] ss:$8 sps:$4 sm:$0xff]  }
  0x21   :  { %1543 = vrcp.f32 %v59_v25  ;;  %808 = vmatpush1.bf16.msra.mxu0 %v1442_v21  ;;  %v1454_v25 = vld [vmem:[#allocation3 + $0x120] ss:$8 sps:$4 sm:$0xff]   ;;  %v1511_v15 = vld [vmem:[#allocation3 + $0xe4] ss:$8 sps:$4 sm:$0xff]   ;;  %v1515_v21 = vld [vmem:[#allocation3 + $0xf0] ss:$8 sps:$4 sm:$0xff]  }
  0x22   :  { %1545 = vrcp.f32 %v135_v27  ;;  %809 = vmatprep.subr.bf16.mxu0 %v1446_v22  ;;  %v1460_v27 = vld [vmem:[#allocation3 + $0x130] ss:$8 sps:$4 sm:$0xff]   ;;  %v1509_v17 = vld [vmem:[#allocation3 + $0xe0] ss:$8 sps:$4 sm:$0xff]  }
  0x23   :  { %v1514_v18 = vld [vmem:[#allocation3 + $0x1c0] ss:$8 sps:$4 sm:$0xff]   ;;  %v1520_v22 = vld [vmem:[#allocation3 + $0x1d0] ss:$8 sps:$4 sm:$0xff]  }
  0x25   :  { %810 = vmatpush1.bf16.msra.mxu0 %v1448_v23  ;;  %v1521_v23 = vld [vmem:[#allocation3 + $0x1e4] ss:$8 sps:$4 sm:$0xff]  }
  0x26   :  { %811 = vmatprep.subr.bf16.mxu0 %v1452_v24  ;;  %v1523_v24 = vld [vmem:[#allocation3 + $0x1e0] ss:$8 sps:$4 sm:$0xff]  }
  0x29   :  { %812 = vmatpush1.bf16.msra.mxu0 %v1454_v25  ;;  %v1524_v25 = vld [vmem:[#allocation3 + $0x1f4] ss:$8 sps:$4 sm:$0xff]  }
  0x2a   :  { %813 = vmatprep.subr.bf16.mxu0 %v1458_v26  ;;  %v1526_v26 = vld [vmem:[#allocation3 + $0x1f0] ss:$8 sps:$4 sm:$0xff]  }
  0x2b   :  { %v1544_v33 = vpop.eup %1543 }
  0x2c   :  { %v1546_v34 = vpop.eup %1545  ;;  %v1666_v35 = vmul.f32 %v1544_v33, %v67_v31  ;;  %v1472_v31 = vld [vmem:[#allocation3 + $0x150] ss:$8 sps:$4 sm:$0xff]  }
  0x2d   :  { %v144_v36 = vmul.f32 %v1546_v34, %v143_v32  ;;  %814 = vmatpush1.bf16.msra.mxu0 %v1460_v27  ;;  %v1476_v32 = vld [vmem:[#allocation3 + $0x164] ss:$8 sps:$4 sm:$0xff]  }
  0x2e   :  { %v70_v37 = vsub.f32 %v50_v1, %v1666_v35  ;;  %815 = vmatprep.subr.bf16.mxu0 %v1464_v28  ;;  %v1527_v27 = vld [vmem:[%s1794_s4 + $0x40] sm:$0xff]   ;;  %v209_v28 = vlaneseq }
  0x2f   :  { %v146_v38 = vsub.f32 %v1266_v3, %v144_v36 }
  0x30   :  { %v71_v39 = vsel %vm69_vm2, 0.0, %v70_v37  ;;  %v1488_v37 = vld [vmem:[#allocation3 + $0x184] ss:$8 sps:$4 sm:$0xff]  }
  0x31   :  { %v72_v40 = vmul.f32 %v71_v39, %v71_v39  ;;  %v147_v41 = vsel %vm145_vm3, 0.0, %v146_v38  ;;  %816 = vmatpush1.bf16.msra.mxu0 %v1466_v29  ;;  %v1490_v38 = vld [vmem:[#allocation3 + $0x180] ss:$8 sps:$4 sm:$0xff]   ;;  %v1695_v29 = vshrl.u32 %v209_v28, 7  ;;  %v1541_v28 = vld [vmem:[%s1794_s4 + $0x78] sm:$0xff]  }
  0x32   :  { %v148_v42 = vmul.f32 %v147_v41, %v147_v41  ;;  %817 = vmatprep.subr.bf16.mxu0 %v1470_v30 }
  0x33   :  { %v73_v43 = vsel %vm52_vm1, %v72_v40, 0.0  ;;  %v1496_v40 = vld [vmem:[#allocation3 + $0x190] ss:$8 sps:$4 sm:$0xff]   ;;  %v211_v30 = vsub.s32 0, %v1695_v29 }
  0x34   :  { %v74_v44 = vrot.slane %v73_v43, 4  ;;  %v149_v45 = vsel %vm52_vm1, %v148_v42, 0.0  ;;  %v1502_v42 = vld [vmem:[#allocation3 + $0x1a0] ss:$8 sps:$4 sm:$0xff]  }
  0x35   :  { %v150_v46 = vrot.slane %v149_v45, 4  ;;  %818 = vmatpush1.bf16.msra.mxu0 %v1472_v31  ;;  %v202_v31 = vld [vmem:[%s1795_s5] sm:$0xf] }
  0x36   :  { %v75_v47 = vadd.f32 %v74_v44, %v73_v43  ;;  %819 = vmatprep.subr.bf16.mxu0 %v1476_v32  ;;  %v215_v32 = vsub.s32 1, %v1695_v29 }
  0x37   :  { %v151_v48 = vadd.f32 %v150_v46, %v149_v45 }
  0x38   :  { %v76_v49 = vrot.slane %v75_v47, 2 }
  0x39   :  { %v152_v50 = vrot.slane %v151_v48, 2 }
  0x3a   :  { %v77_v51 = vadd.f32 %v76_v49, %v75_v47  ;;  %v1431_v49 = vld [vmem:[#allocation3] ss:$8 sps:$4 sm:$0xff]  }
  0x3b   :  { %v153_v52 = vadd.f32 %v152_v50, %v151_v48  ;;  %v1433_v48 = vld [vmem:[#allocation3 + $0x4] ss:$8 sps:$4 sm:$0xff]   ;;  %v1436_v50 = vld [vmem:[#allocation3 + $0x14] ss:$8 sps:$4 sm:$0xff]  }
  0x3c   :  { %v78_v53 = vrot.slane %v77_v51, 1 }
  0x3d   :  { %v154_v54 = vrot.slane %v153_v52, 1 }
  0x3e   :  { %v79_v55 = vadd.f32 %v78_v53, %v77_v51  ;;  %v1434_v51 = vld [vmem:[#allocation3 + $0x10] ss:$8 sps:$4 sm:$0xff]   ;;  %v1437_v53 = vld [vmem:[#allocation3 + $0x20] ss:$8 sps:$4 sm:$0xff]  }
  0x3f   :  { %v155_v56 = vadd.f32 %v154_v54, %v153_v52  ;;  %v1439_v52 = vld [vmem:[#allocation3 + $0x24] ss:$8 sps:$4 sm:$0xff]   ;;  %v1445_v54 = vld [vmem:[#allocation3 + $0x34] ss:$8 sps:$4 sm:$0xff]  }
  0x40   :  { %v80_v57 = vmul.f32 %v1544_v33, %v79_v55  ;;  %v1478_v33 = vld [vmem:[#allocation3 + $0x160] ss:$8 sps:$4 sm:$0xff]   ;;  %v1443_v55 = vld [vmem:[#allocation3 + $0x30] ss:$8 sps:$4 sm:$0xff]  }
  0x41   :  { %v156_v58 = vmul.f32 %v1546_v34, %v155_v56  ;;  %v1482_v34 = vld [vmem:[#allocation3 + $0x174] ss:$8 sps:$4 sm:$0xff]   ;;  %820 = vmatpush1.bf16.msra.mxu0 %v1478_v33  ;;  %v1451_v56 = vld [vmem:[#allocation3 + $0x44] ss:$8 sps:$4 sm:$0xff]   ;;  %v212_v33 = vrot.slane %v202_v31, %v211_v30 }
  0x42   :  { %v81_v59 = vadd.f32 1e-05, %v80_v57  ;;  %821 = vmatprep.subr.bf16.mxu0 %v1482_v34  ;;  %v1449_v57 = vld [vmem:[#allocation3 + $0x40] ss:$8 sps:$4 sm:$0xff]   ;;  %v216_v34 = vrot.slane %v202_v31, %v215_v32 }
  0x43   :  { %v157_v60 = vadd.f32 1e-05, %v156_v58  ;;  %v1457_v58 = vld [vmem:[#allocation3 + $0x54] ss:$8 sps:$4 sm:$0xff]  }
  0x44   :  { %1547 = vrsqrt.f32 %v81_v59  ;;  %vm84_vm4 = vcmp.eq.f32.partialorder %v81_v59, inf  ;;  %v87_v62 = vand.u32 2147483648, %v81_v59  ;;  %vm86_vm5 = vcmp.eq.f32.partialorder %v81_v59, 0.0 }
  0x45   :  { %1549 = vrsqrt.f32 %v157_v60  ;;  %vm160_vm6 = vcmp.eq.f32.partialorder %v157_v60, inf  ;;  %v163_v1 = vand.u32 2147483648, %v157_v60  ;;  %vm162_vm7 = vcmp.eq.f32.partialorder %v157_v60, 0.0 }
  0x4e   :  { %v1548_v61 = vpop.eup %1547 }
  0x4f   :  { %v1550_v63 = vpop.eup %1549  ;;  %v83_v0 = vmul.f32 %v1548_v61, %v81_v59  ;;  %v1461_v61 = vld [vmem:[#allocation3 + $0x60] ss:$8 sps:$4 sm:$0xff]  }
  0x50   :  { %v159_v2 = vmul.f32 %v1550_v63, %v157_v60  ;;  %v1467_v63 = vld [vmem:[#allocation3 + $0x70] ss:$8 sps:$4 sm:$0xff]  }
  0x51   :  { %v85_v3 = vsel %vm84_vm4, %v81_v59, %v83_v0  ;;  %v1455_v59 = vld [vmem:[#allocation3 + $0x50] ss:$8 sps:$4 sm:$0xff]   ;;  %v1475_v0 = vld [vmem:[#allocation3 + $0x84] ss:$8 sps:$4 sm:$0xff]  }
  0x52   :  { %v1671_v4 = vsel %vm86_vm5, %v87_v62, %v85_v3  ;;  %v161_v5 = vsel %vm160_vm6, %v157_v60, %v159_v2  ;;  %v1463_v60 = vld [vmem:[#allocation3 + $0x64] ss:$8 sps:$4 sm:$0xff]   ;;  %v1469_v62 = vld [vmem:[#allocation3 + $0x74] ss:$8 sps:$4 sm:$0xff]   ;;  %v1479_v3 = vld [vmem:[#allocation3 + $0x90] ss:$8 sps:$4 sm:$0xff]  }
  0x53   :  { %1551 = vrcp.f32 %v1671_v4  ;;  %v164_v6 = vsel %vm162_vm7, %v163_v1, %v161_v5  ;;  %v1473_v1 = vld [vmem:[#allocation3 + $0x80] ss:$8 sps:$4 sm:$0xff]   ;;  %v1481_v2 = vld [vmem:[#allocation3 + $0x94] ss:$8 sps:$4 sm:$0xff]   ;;  %v1487_v5 = vld [vmem:[#allocation3 + $0xa4] ss:$8 sps:$4 sm:$0xff]  }
  0x54   :  { %1553 = vrcp.f32 %v164_v6  ;;  %1246 = vrot.lane.b32.xlu1 %v164_v6, %s1581_s20  ;;  %v1485_v6 = vld [vmem:[#allocation3 + $0xa0] ss:$8 sps:$4 sm:$0xff]   ;;  %vm1037_vm7 = vcmask 130048  }
  0x58   :  { %1251 = vrot.lane.b32.xlu1 %v144_v36, %s1581_s20  ;;  %v1484_v36 = vld [vmem:[#allocation3 + $0x170] ss:$8 sps:$4 sm:$0xff]  }
  0x59   :  { %822 = vmatpush1.bf16.msra.mxu0 %v1484_v36 }
  0x5a   :  { %823 = vmatprep.subr.bf16.mxu0 %v1488_v37 }
  0x5d   :  { %v1552_v7 = vpop.eup %1551  ;;  %824 = vmatpush1.bf16.msra.mxu0 %v1490_v38 }
  0x5e   :  { %v1554_v8 = vpop.eup %1553  ;;  %v90_v9 = vmul.f32 %v1552_v7, %v71_v39  ;;  %v1494_v39 = vld [vmem:[#allocation3 + $0x194] ss:$8 sps:$4 sm:$0xff]  }
  0x5f   :  { %v166_v10 = vmul.f32 %v1554_v8, %v147_v41  ;;  %825 = vmatprep.subr.bf16.mxu0 %v1494_v39  ;;  %v1500_v41 = vld [vmem:[#allocation3 + $0x1a4] ss:$8 sps:$4 sm:$0xff]   ;;  %v1493_v7 = vld [vmem:[#allocation3 + $0xb4] ss:$8 sps:$4 sm:$0xff]   ;;  %v1491_v8 = vld [vmem:[#allocation3 + $0xb0] ss:$8 sps:$4 sm:$0xff]  }
  0x60   :  { %91 = vxpose.xlu0.b32.start.end [1/1] (short) (narrow) %v90_v9, 8  ;;  %v1499_v9 = vld [vmem:[#allocation3 + $0xc4] ss:$8 sps:$4 sm:$0xff]   ;;  %v219_v39 = vsub.s32 2, %v1695_v29 }
  0x61   :  { %826 = vmatpush1.bf16.msra.mxu0 %v1496_v40 }
  0x62   :  { %827 = vmatprep.subr.bf16.mxu0 %v1500_v41 }
  0x64   :  { %167 = vxpose.xlu0.b32.start.end [1/1] (short) (narrow) %v166_v10, 8  ;;  %v1497_v10 = vld [vmem:[#allocation3 + $0xc0] ss:$8 sps:$4 sm:$0xff]  }
  0x65   :  { %828 = vmatpush1.bf16.msra.mxu0 %v1502_v42  ;;  %v223_v42 = vsub.s32 3, %v1695_v29 }
  0x66   :  { %829 = vmatprep.subr.bf16.mxu0 %v1506_v12 }
  0xe0   :  { %v107_v43 = vpop.trf.xlu0 }
  0xe1   :  { %124 = vst.msk [vmem:[#allocation2] sm:$0x3f] %vm123_vm9, %v107_v43 }
  0xe4   :  { %v183_v44 = vpop.trf.xlu0 }
  0xe5   :  { %199 = vst.msk [vmem:[#allocation2 + $0x8] sm:$0x3f] %vm123_vm9, %v183_v44 }
  0xe8   :  { %v1683_v45 = vld [vmem:[#allocation2] sm:$0xff] }
  0xec   :  { %v1685_v46 = vld [vmem:[#allocation2 + $0x8] sm:$0xff] }
  0xed   :  { %v205_v47 = vpack.c.bf16 %v1685_v46, %v1683_v45 }
  0xef   :  { %1273 = vmatmul.mubr.msk.bf16.vlgmr.msra.gmra.mrb[0].mxu1 %vm47_vm0, %v205_v47 }
  0xf0   :  { %299 = vmatpush1.bf16.msra.mxu1 %v250_v19  ;;  %330 = vmatprep.mubr.bf16.mxu1 %v1583_v14  ;;  %v1508_v14 = vld [vmem:[#allocation3 + $0x1b0] ss:$8 sps:$4 sm:$0xff]   ;;  %v1517_v19 = vld [vmem:[#allocation3 + $0xf4] ss:$8 sps:$4 sm:$0xff]  }
  0xf1   :  { %764 = vmatprep.subr.bf16.mxu1 %v1433_v48  ;;  %830 = vmatpush1.bf16.msra.mxu0 %v1508_v14 }
  0xf2   :  { %831 = vmatprep.subr.bf16.mxu0 %v1512_v16  ;;  %v1529_v16 = vld [vmem:[%s1794_s4 + $0x48] sm:$0xff]  }
  0xf5   :  { %832 = vmatpush1.bf16.msra.mxu0 %v1514_v18  ;;  %v1531_v18 = vld [vmem:[%s1794_s4 + $0x50] sm:$0xff]  }
  0xf6   :  { %833 = vmatprep.subr.bf16.mxu0 %v1518_v20  ;;  %v1533_v20 = vld [vmem:[%s1794_s4 + $0x58] sm:$0xff]  }
  0xf7   :  { %1275 = vmatmul.mubr.msk.bf16.vlgmr.msra.gmra.mrb[4].mxu1 %vm47_vm0, %v205_v47 }
  0xf8   :  { %765 = vmatpush1.bf16.msra.mxu1 %v1431_v49 }
  0xf9   :  { %766 = vmatprep.subr.bf16.mxu1 %v1436_v50  ;;  %834 = vmatpush1.bf16.msra.mxu0 %v1520_v22  ;;  %v1535_v22 = vld [vmem:[%s1794_s4 + $0x60] sm:$0xff]  }
  0xfa   :  { %835 = vmatprep.subr.bf16.mxu0 %v1521_v23  ;;  %v1536_v23 = vld [vmem:[%s1794_s4 + $0x20] sm:$0xff]  }
  0xfc   :  { %767 = vmatpush1.bf16.msra.mxu1 %v1434_v51  ;;  %v220_v51 = vrot.slane %v202_v31, %v219_v39 }
  0xfd   :  { %768 = vmatprep.subr.bf16.mxu1 %v1439_v52  ;;  %836 = vmatpush1.bf16.msra.mxu0 %v1523_v24  ;;  %v1537_v24 = vld [vmem:[%s1794_s4 + $0x68] sm:$0xff]  }
  0xfe   :  { %837 = vmatprep.subr.bf16.mxu0 %v1524_v25  ;;  %v1538_v25 = vld [vmem:[%s1794_s4 + $0x28] sm:$0xff]  }
 0x100   :  { %769 = vmatpush1.bf16.msra.mxu1 %v1437_v53  ;;  %v224_v53 = vrot.slane %v202_v31, %v223_v42  ;;  %v1542_v31 = vld [vmem:[%s1794_s4 + $0x38] sm:$0xff]  }
 0x101   :  { %770 = vmatprep.subr.bf16.mxu1 %v1445_v54  ;;  %838 = vmatpush1.bf16.msra.mxu0 %v1526_v26  ;;  %v1539_v26 = vld [vmem:[%s1794_s4 + $0x70] sm:$0xff]  }
 0x102   :  { %1362 = vmatprep.subr.bf16.mxu0 %v1527_v27  ;;  %v1540_v27 = vld [vmem:[%s1794_s4 + $0x30] sm:$0xff]  }
 0x104   :  { %771 = vmatpush1.bf16.msra.mxu1 %v1443_v55 }
 0x105   :  { %772 = vmatprep.subr.bf16.mxu1 %v1451_v56 }
 0x108   :  { %773 = vmatpush1.bf16.msra.mxu1 %v1449_v57 }
 0x109   :  { %774 = vmatprep.subr.bf16.mxu1 %v1457_v58 }
 0x10c   :  { %775 = vmatpush1.bf16.msra.mxu1 %v1455_v59 }
 0x10d   :  { %776 = vmatprep.subr.bf16.mxu1 %v1463_v60 }
 0x110   :  { %777 = vmatpush1.bf16.msra.mxu1 %v1461_v61 }
 0x111   :  { %778 = vmatprep.subr.bf16.mxu1 %v1469_v62 }
 0x114   :  { %779 = vmatpush1.bf16.msra.mxu1 %v1467_v63 }
 0x115   :  { %780 = vmatprep.subr.bf16.mxu1 %v1475_v0 }
 0x118   :  { %781 = vmatpush1.bf16.msra.mxu1 %v1473_v1 }
 0x119   :  { %782 = vmatprep.subr.bf16.mxu1 %v1481_v2 }
 0x11c   :  { %783 = vmatpush1.bf16.msra.mxu1 %v1479_v3 }
 0x11d   :  { %784 = vmatprep.subr.bf16.mxu1 %v1487_v5 }
 0x120   :  { %785 = vmatpush1.bf16.msra.mxu1 %v1485_v6 }
 0x121   :  { %786 = vmatprep.subr.bf16.mxu1 %v1493_v7 }
 0x124   :  { %787 = vmatpush1.bf16.msra.mxu1 %v1491_v8 }
 0x125   :  { %788 = vmatprep.subr.bf16.mxu1 %v1499_v9 }
 0x128   :  { %789 = vmatpush1.bf16.msra.mxu1 %v1497_v10 }
 0x129   :  { %790 = vmatprep.subr.bf16.mxu1 %v1505_v11 }
 0x12c   :  { %791 = vmatpush1.bf16.msra.mxu1 %v1503_v13 }
 0x12d   :  { %792 = vmatprep.subr.bf16.mxu1 %v1511_v15  ;;  %v1528_v15 = vld [vmem:[%s1794_s4] sm:$0xff]  }
 0x130   :  { %793 = vmatpush1.bf16.msra.mxu1 %v1509_v17  ;;  %v1530_v17 = vld [vmem:[%s1794_s4 + $0x8] sm:$0xff]  }
 0x131   :  { %794 = vmatprep.subr.bf16.mxu1 %v1517_v19  ;;  %v1532_v19 = vld [vmem:[%s1794_s4 + $0x10] sm:$0xff]  }
 0x134   :  { %795 = vmatpush1.bf16.msra.mxu1 %v1515_v21  ;;  %v1534_v21 = vld [vmem:[%s1794_s4 + $0x18] sm:$0xff]  }
 0x1c2   :  { %v289_v36 = vpop.f32.mrb[0].mxu1 }
 0x1c3   :  { %v290_v37 = vadd.f32 %v289_v36, %v212_v33  ;;  %v291_v38 = vpop.f32.mrb[1].mxu1 }
 0x1c4   :  { %v292_v40 = vadd.f32 %v291_v38, %v216_v34  ;;  %v293_v41 = vpop.f32.mrb[2].mxu1 }
 0x1c5   :  { %v349_v43 = vmul.f32 0.01, %v290_v37  ;;  %v294_v44 = vadd.f32 %v293_v41, %v212_v33  ;;  %v295_v47 = vpop.f32.mrb[3].mxu1  ;;  %vm341_vm10 = vcmp.gt.f32.partialorder %v290_v37, 0.0  ;;  %v203_v33 = vld [vmem:[%s1795_s5 + $0x4] sm:$0x3] }
 0x1c6   :  { %v350_v48 = vmul.f32 0.01, %v292_v40  ;;  %v296_v49 = vadd.f32 %v295_v47, %v216_v34  ;;  %vm342_vm11 = vcmp.gt.f32.partialorder %v292_v40, 0.0  ;;  %v437_v38 = vrot.slane %v203_v33, %v211_v30 }
 0x1c7   :  { %vm345_vm12 = vcmp.gt.f32.partialorder %v294_v44, 0.0  ;;  %v353_v50 = vmul.f32 0.01, %v294_v44  ;;  %v357_v54 = vsel %vm341_vm10, %v290_v37, %v349_v43 }
 0x1c8   :  { %vm346_vm13 = vcmp.gt.f32.partialorder %v296_v49, 0.0  ;;  %v354_v52 = vmul.f32 0.01, %v296_v49  ;;  %v358_v58 = vsel %vm342_vm11, %v292_v40, %v350_v48  ;;  %v441_v40 = vrot.slane %v203_v33, %v215_v32 }
 0x1c9   :  { %v361_v55 = vsel %vm345_vm12, %v294_v44, %v353_v50 }
 0x1ca   :  { %v365_v56 = vpack.c.bf16 %v361_v55, %v357_v54  ;;  %v332_v57 = vpop.f32.mrb[4].mxu1  ;;  %v362_v59 = vsel %vm346_vm13, %v296_v49, %v354_v52 }
 0x1cb   :  { %v333_v60 = vadd.f32 %v332_v57, %v220_v51  ;;  %v334_v61 = vpop.f32.mrb[5].mxu1  ;;  %v366_v62 = vpack.c.bf16 %v362_v59, %v358_v58 }
 0x1cc   :  { %v335_v63 = vadd.f32 %v334_v61, %v224_v53  ;;  %v336_v0 = vpop.f32.mrb[6].mxu1 }
 0x1cd   :  { %v351_v1 = vmul.f32 0.01, %v333_v60  ;;  %v337_v2 = vadd.f32 %v336_v0, %v220_v51  ;;  %v338_v3 = vpop.f32.mrb[7].mxu1  ;;  %796 = vmatprep.mubr.bf16.mxu1 %v366_v62  ;;  %vm343_vm14 = vcmp.gt.f32.partialorder %v333_v60, 0.0  ;;  %v1033_v62 = vld [vmem:[%s1796_s6] sm:$0xff] }
 0x1ce   :  { %v352_v5 = vmul.f32 0.01, %v335_v63  ;;  %v339_v6 = vadd.f32 %v338_v3, %v224_v53  ;;  %797 = vmatmul.mubr.bf16.vlgmr.msra.gmra.mrb[8].mxu1 %v365_v56  ;;  %vm344_vm1 = vcmp.gt.f32.partialorder %v335_v63, 0.0 }
 0x1cf   :  { %vm347_vm15 = vcmp.gt.f32.partialorder %v337_v2, 0.0  ;;  %v355_v7 = vmul.f32 0.01, %v337_v2  ;;  %v359_v9 = vsel %vm343_vm14, %v333_v60, %v351_v1  ;;  %1395 = vmatprep.mubr.msk.f32.mxu1 %vm1037_vm7, %v1033_v62 }
 0x1d0   :  { %v356_v8 = vmul.f32 0.01, %v339_v6  ;;  %vm348_vm2 = vcmp.gt.f32.partialorder %v339_v6, 0.0  ;;  %v360_v11 = vsel %vm344_vm1, %v335_v63, %v352_v5 }
 0x1d1   :  { %v363_v10 = vsel %vm347_vm15, %v337_v2, %v355_v7  ;;  %v1119_v7 = vld [vmem:[%s1798_s8] sm:$0xff] }
 0x1d2   :  { %v364_v12 = vsel %vm348_vm2, %v339_v6, %v356_v8  ;;  %v367_v13 = vpack.c.bf16 %v363_v10, %v359_v9  ;;  %v1034_v8 = vld [vmem:[%s1796_s6 + $0x8] sm:$0xff]  ;;  %v1035_v9 = vld [vmem:[%s1797_s7] sm:$0xff] }
 0x1d3   :  { %v368_v14 = vpack.c.bf16 %v364_v12, %v360_v11  ;;  %v1036_v11 = vld [vmem:[%s1797_s7 + $0x8] sm:$0xff]  ;;  %v1358_v12 = vld [vmem:[%s1795_s5 + $0x6] ss:$0 sm:$0xff]  ;;  %s1584_s7 = smov 120  }
 0x1d5   :  { %839 = vmatprep.mubr.bf16.mxu0 %v368_v14 }
 0x1d6   :  { %840 = vmatmul.mubr.bf16.vlgmr.msra.gmra.mrb[0].mxu0 %v367_v13 }
 0x1d7   :  { %1363 = vmatpush3.bf16.msra.mxu0 %v1528_v15 }
 0x1d8   :  { %1364 = vmatprep.subr.bf16.mxu0 %v1529_v16 }
 0x1db   :  { %1365 = vmatpush3.bf16.msra.mxu0 %v1530_v17 }
 0x1dc   :  { %1366 = vmatprep.subr.bf16.mxu0 %v1531_v18 }
 0x1df   :  { %1367 = vmatpush3.bf16.msra.mxu0 %v1532_v19 }
 0x1e0   :  { %1368 = vmatprep.subr.bf16.mxu0 %v1533_v20 }
 0x1e3   :  { %1369 = vmatpush3.bf16.msra.mxu0 %v1534_v21 }
 0x1e4   :  { %1370 = vmatprep.subr.bf16.mxu0 %v1535_v22 }
 0x1e7   :  { %1371 = vmatpush3.bf16.msra.mxu0 %v1536_v23 }
 0x1e8   :  { %1372 = vmatprep.subr.bf16.mxu0 %v1537_v24 }
 0x1eb   :  { %1373 = vmatpush3.bf16.msra.mxu0 %v1538_v25 }
 0x1ec   :  { %1374 = vmatprep.subr.bf16.mxu0 %v1539_v26 }
 0x1ef   :  { %1375 = vmatpush3.bf16.msra.mxu0 %v1540_v27 }
 0x1f0   :  { %1376 = vmatprep.subr.bf16.mxu0 %v1541_v28 }
 0x1f3   :  { %1377 = vmatpush3.bf16.msra.mxu0 %v1542_v31 }
 0x2a1   :  { %v798_v34 = vpop.f32.mrb[8].mxu1 }
 0x2a2   :  { %v800_v36 = vpop.f32.mrb[9].mxu1  ;;  %v799_v41 = vadd.f32 %v798_v34, %v437_v38 }
 0x2a3   :  { %v802_v37 = vpop.f32.mrb[10].mxu1  ;;  %v801_v42 = vadd.f32 %v800_v36, %v441_v40 }
 0x2a4   :  { %v804_v39 = vpop.f32.mrb[11].mxu1  ;;  %v803_v44 = vadd.f32 %v802_v37, %v437_v38 }
 0x2a5   :  { %v805_v49 = vadd.f32 %v804_v39, %v441_v40 }
 0x2a9   :  { %v841_v43 = vpop.f32.mrb[0].mxu0 }
 0x2aa   :  { %v842_v47 = vadd.f32 %v841_v43, %v799_v41  ;;  %v843_v48 = vpop.f32.mrb[1].mxu0 }
 0x2ab   :  { %v844_v50 = vadd.f32 %v843_v48, %v801_v42  ;;  %v845_v51 = vpop.f32.mrb[2].mxu0 }
 0x2ac   :  { %v854_v52 = vmul.f32 0.01, %v842_v47  ;;  %v846_v53 = vadd.f32 %v845_v51, %v803_v44  ;;  %v847_v54 = vpop.f32.mrb[3].mxu0  ;;  %vm850_vm3 = vcmp.gt.f32.partialorder %v842_v47, 0.0 }
 0x2ad   :  { %v855_v55 = vmul.f32 0.01, %v844_v50  ;;  %v848_v56 = vadd.f32 %v847_v54, %v805_v49  ;;  %vm851_vm4 = vcmp.gt.f32.partialorder %v844_v50, 0.0 }
 0x2ae   :  { %vm852_vm5 = vcmp.gt.f32.partialorder %v846_v53, 0.0  ;;  %v856_v30 = vmul.f32 0.01, %v846_v53  ;;  %v858_v32 = vsel %vm850_vm3, %v842_v47, %v854_v52 }
 0x2af   :  { %vm853_vm6 = vcmp.gt.f32.partialorder %v848_v56, 0.0  ;;  %v857_v29 = vmul.f32 0.01, %v848_v56  ;;  %v859_v59 = vsel %vm851_vm4, %v844_v50, %v855_v55 }
 0x2b0   :  { %v860_v57 = vsel %vm852_vm5, %v846_v53, %v856_v30 }
 0x2b1   :  { %v862_v58 = vpack.c.bf16 %v860_v57, %v858_v32  ;;  %v861_v60 = vsel %vm853_vm6, %v848_v56, %v857_v29 }
 0x2b2   :  { %v863_v61 = vpack.c.bf16 %v861_v60, %v859_v59 }
 0x2b4   :  { %1024 = vmatprep.mubr.bf16.mxu0 %v863_v61 }
 0x2b5   :  { %1025 = vmatmul.mubr.bf16.vlgmr.msra.gmra.mrb[4].mxu0 %v862_v58 }
 0x388   :  { %v1378_v63 = vpop.f32.mrb[4].mxu0 }
 0x389   :  { %v1379_v0 = vpop.f32.mrb[5].mxu0 }
 0x38a   :  { %v1380_v1 = vadd.f32 %v1379_v0, %v1378_v63  ;;  %v1381_v2 = vpop.f32.mrb[6].mxu0 }
 0x38b   :  { %v1382_v3 = vpop.f32.mrb[7].mxu0 }
 0x38c   :  { %v1383_v5 = vadd.f32 %v1382_v3, %v1381_v2 }
 0x38e   :  { %v1403_v6 = vpack.c.bf16 %v1383_v5, %v1380_v1 }
 0x390   :  { %1404 = vmatprep.subr.bf16.mxu1 %v1403_v6 }
 0x391   :  { %1406 = vmatpush3.bf16.msra.mxu1 %v1403_v6 }
 0x392   :  { %1398 = vmatprep.subr.mxu1 %v1119_v7 }
 0x394   :  { %1396 = vmatmul.mubr.msk.f32.vlgmr.msra.gmra.mrb[12].mxu1 %vm1037_vm7, %v1034_v8 }
 0x395   :  { %1400 = vmatprep.mubr.msk.f32.mxu1 %vm47_vm0, %v1683_v45  ;;  %1399 = vmatpush3.msra.mxu1 %v1119_v7 }
 0x39c   :  { %1401 = vmatmul.mubr.msk.f32.vlgmr.msra.gmra.mrb[12].mxu1 %vm47_vm0, %v1685_v46  ;;  %v1247_v46 = vpop.permute.xlu1 %1246  ;;  %vm1243_vm0 = vcmask 23552  }
 0x3a0   :  { %v1252_v18 = vpop.permute.xlu1 %1251 }
 0x46f   :  { %v1402_v10 = vpop.f32.mrb[12].mxu1 }
 0x470   :  { %v1198_v13 = vpop.f32.mrb[13].mxu1  ;;  %v1415_v45 = vadd.f32 %v1402_v10, %v1036_v11 }
 0x471   :  { %v1417_v14 = vadd.f32 %v1198_v13, %v1035_v9 }
 0x472   :  { %v1416_v16 = vadd.f32 %v1415_v45, %v1358_v12 }
 0x473   :  { %v1418_v15 = vadd.f32 %v1417_v14, %v1358_v12 }
 0x475   :  { %1209 = vxpose.xlu0.b32.start [1/2] (short) (narrow) %v1418_v15, 8 }
 0x479   :  { %1210 = vxpose.xlu0.b32.end [2/2] (short) (narrow) %v1416_v16, 8 }
 0x4f5   :  { %v1225_v17 = vpop.trf.xlu0 }
 0x4f6   :  { %v1241_v19 = vmul.f32 %v1225_v17, %v1671_v4  ;;  %v1249_v20 = vmul.f32 %v1247_v46, %v1225_v17 }
 0x4f8   :  { %v1242_v21 = vadd.f32 %v1241_v19, %v1666_v35  ;;  %v1254_v22 = vadd.f32 %v1252_v18, %v1249_v20 }
 0x4fa   :  { %1256 = vrot.lane.b32.xlu1 %v1254_v22, %s1584_s7  ;;  %1244 = vst.msk [vmem:[%s1799_s9] sm:$0xff] %vm1243_vm0, %v1242_v21 }
 0x56c   :  { %v1257_v23 = vpop.permute.xlu1 %1256 }
 0x56d   :  { %1361 = vst.msk [vmem:[%s1799_s9 + $0x8] sm:$0xff] %vm1243_vm0, %v1257_v23 }
 0x56e   :  { %1265 = vsyncpa [#allocation4], 1 }

</bundles_post_ra>
